<compile_context>
chip_gen: v7x
topology: tpu7x:2x2x1
jax: 0.10.0
libtpu: 0.0.40
codegen_flags: <defaults>
</compile_context>

<pallas_src>
import functools

import jax
import jax.numpy as jnp
from jax.experimental import pallas as pl
from jax.experimental.pallas import tpu as pltpu


def _conv2d_block_kernel(x_ref, band_ref, b_ref, o_ref, xp_ref, *, kh, stride,
                         dilation, pad, negative_slope):
    # x_ref:    (1, H, W*Cin)         unpadded, lane-dense packed input
    # band_ref: (KH, W*Cin, Wo*Cout)  banded weight (W pad/stride/dilation folded in)
    # b_ref:    (1, Wo*Cout)          bias tiled to the lane-dense output layout
    # o_ref:    (1, Ho, Wo*Cout)      lane-dense output
    # xp_ref:   (H + 2*pad, W*Cin)    VMEM scratch: H-zero-padded copy of x
    _, ho, wocout = o_ref.shape
    _, h, wcin = x_ref.shape

    if pad > 0:
        xp_ref[...] = jnp.zeros_like(xp_ref)      # zero H borders (tiny)
        xp_ref[pl.ds(pad, h), :] = x_ref[0]       # valid interior
        xp = xp_ref[...]
    else:
        xp = x_ref[0]

    acc = jnp.zeros((ho, wocout), jnp.float32)
    for i in range(kh):                            # KH is small; static unroll
        r0 = i * dilation
        rows = jax.lax.slice(
            xp, (r0, 0), (r0 + stride * (ho - 1) + 1, wcin), (stride, 1)
        )                                          # (Ho, W*Cin), no reshape
        acc += jnp.dot(rows, band_ref[i], preferred_element_type=jnp.float32)

    acc = acc + b_ref[...]                         # (1, Wo*Cout) broadcasts
    acc = jnp.where(acc >= 0, acc, negative_slope * acc)   # LeakyReLU(0.2)
    o_ref[0] = acc.astype(o_ref.dtype)             # lane-dense store, no reshape


def conv2d_block_forward(x_nchw, weight, bias, *, stride=1, padding=0,
                         conv_padding=0, dilation=1, negative_slope=0.2):
    """Conv2dBlock forward: ZeroPad2d(padding) -> Conv2d(bias) -> LeakyReLU(0.2).

    x_nchw: (N, Cin, H, W)   weight: (Cout, Cin, KH, KW)   bias: (Cout,)
    Returns: (N, Cout, Ho, Wo)
    """
    n, cin, h, w = x_nchw.shape
    cout, _, kh, kw = weight.shape
    p = padding + conv_padding                     # both are zero-padding
    ho = (h + 2 * p - dilation * (kh - 1) - 1) // stride + 1
    wo = (w + 2 * p - dilation * (kw - 1) - 1) // stride + 1
    wcin, wocout = w * cin, wo * cout

    # Lane-dense packing: NCHW -> (N, H, W*Cin). (In a multi-layer model this
    # packed layout would be kept end-to-end so the transpose disappears.)
    x_packed = jnp.transpose(x_nchw, (0, 2, 3, 1)).reshape(n, h, wcin)

    # Banded weight: band[i, v*Cin + c, w*Cout + o] = K[o, c, i, j] where
    # v = w*stride + j*dilation - p (dropped if v outside [0, W)). This folds
    # the W zero-padding, W stride and W dilation into one matmul operand per
    # kernel row, so each image needs only KH MXU dots.
    wt = jnp.transpose(weight, (2, 3, 1, 0))       # (KH, KW, Cin, Cout)
    v_idx = jnp.arange(w)
    tgt = (jnp.arange(wo)[None, :, None] * stride
           + jnp.arange(kw)[:, None, None] * dilation - p)     # (KW, Wo, 1)
    sel = (tgt == v_idx[None, None, :]).astype(wt.dtype)       # (KW, Wo, W)
    band = jnp.einsum('jwv,ijco->ivcwo', sel, wt).reshape(kh, wcin, wocout)

    bias_tiled = jnp.tile(bias, wo).reshape(1, wocout)          # lane-dense bias

    kernel = functools.partial(
        _conv2d_block_kernel, kh=kh, stride=stride, dilation=dilation, pad=p,
        negative_slope=negative_slope)

    # TODO(synk): for large images on v7x (64 MiB VMEM), add an Ho-row-tile
    # grid axis with halo'd input blocks instead of one whole image per step.
    out_flat = pl.pallas_call(
        kernel,
        out_shape=jax.ShapeDtypeStruct((n, ho, wocout), x_nchw.dtype),
        grid_spec=pltpu.PrefetchScalarGridSpec(
            num_scalar_prefetch=0,
            grid=(n,),
            in_specs=[
                pl.BlockSpec((1, h, wcin), lambda i: (i, 0, 0)),
                pl.BlockSpec((kh, wcin, wocout), lambda i: (0, 0, 0)),
                pl.BlockSpec((1, wocout), lambda i: (0, 0)),
            ],
            out_specs=pl.BlockSpec((1, ho, wocout), lambda i: (i, 0, 0)),
            scratch_shapes=[pltpu.VMEM((h + 2 * p, wcin), x_nchw.dtype)],
        ),
        compiler_params=pltpu.CompilerParams(
            dimension_semantics=("parallel",),
            vmem_limit_bytes=32 * 1024 * 1024),
    )(x_packed, band, bias_tiled)

    # Unpack lane-dense output back to the module's NCHW convention.
    return jnp.transpose(out_flat.reshape(n, ho, wo, cout), (0, 3, 1, 2))


def _reference(x_nchw, weight, bias, *, stride, padding, dilation, negative_slope):
    xp = jnp.pad(x_nchw, ((0, 0), (0, 0), (padding, padding), (padding, padding)))
    y = jax.lax.conv_general_dilated(
        xp, weight, window_strides=(stride, stride), padding="VALID",
        rhs_dilation=(dilation, dilation),
        dimension_numbers=("NCHW", "OIHW", "NCHW"))
    y = y + bias.reshape(1, -1, 1, 1)
    return jnp.where(y >= 0, y, negative_slope * y)


if __name__ == "__main__":
    # Conv2dBlock(input_dim=4, output_dim=8, kernel_size=3, stride=1, padding=1,
    #             pad_type='zeros', activation='lrelu') -- other args default.
    key = jax.random.PRNGKey(0)
    k_x, k_w, k_b = jax.random.split(key, 3)

    N, CIN, H, W = 2, 4, 16, 16
    COUT, KH, KW = 8, 3, 3

    x = jax.random.normal(k_x, (N, CIN, H, W), dtype=jnp.float32)
    fan_in = CIN * KH * KW
    weight = jax.random.normal(k_w, (COUT, CIN, KH, KW), dtype=jnp.float32) / jnp.sqrt(fan_in)
    bias = jax.random.normal(k_b, (COUT,), dtype=jnp.float32) * 0.1

    # Default config: kernel 3, stride 1, padding 1, LeakyReLU(0.2).
    out = conv2d_block_forward(x, weight, bias, stride=1, padding=1,
                               conv_padding=0, dilation=1, negative_slope=0.2)
    out = jax.block_until_ready(out)
    ref = _reference(x, weight, bias, stride=1, padding=1, dilation=1,
                     negative_slope=0.2)
    assert out.shape == (N, COUT, H, W), out.shape
    assert jnp.allclose(out, ref, atol=1e-4, rtol=1e-4), float(jnp.max(jnp.abs(out - ref)))

    # Dilated variant (stride=1) exercising the banded-weight / dilation path.
    out2 = conv2d_block_forward(x, weight, bias, stride=1, padding=2,
                                conv_padding=0, dilation=2, negative_slope=0.2)
    out2 = jax.block_until_ready(out2)
    ref2 = _reference(x, weight, bias, stride=1, padding=2, dilation=2,
                      negative_slope=0.2)
    assert jnp.allclose(out2, ref2, atol=1e-4, rtol=1e-4), float(jnp.max(jnp.abs(out2 - ref2)))

    print("KERNEL_OK")
</pallas_src>

<mosaic_0001>
module attributes {stable_mosaic.version = 11 : i64} {
  func.func @_conv2d_block_kernel(%arg0: i32, %arg1: memref<1x16x64xf32, #tpu.memory_space<vmem>>, %arg2: memref<3x64x128xf32, #tpu.memory_space<vmem>>, %arg3: memref<1x128xf32, #tpu.memory_space<vmem>>, %arg4: memref<1x16x128xf32, #tpu.memory_space<vmem>>, %arg5: memref<18x64xf32, #tpu.memory_space<vmem>>) attributes {dimension_semantics = [#tpu.dimension_semantics<parallel>], iteration_bounds = array<i64: 2>, scalar_prefetch = 0 : i64, scratch_operands = 1 : i64, tpu.core_type = #tpu.core_type<tc>, window_params = [{transform_indices = @transform_0, window_bounds = array<i64: 1, 16, 64>}, {pipeline_mode = #tpu.pipeline_mode<synchronous>, transform_indices = @transform_1, window_bounds = array<i64: 3, 64, 128>}, {pipeline_mode = #tpu.pipeline_mode<synchronous>, transform_indices = @transform_2, window_bounds = array<i64: 1, 128>}, {transform_indices = @transform_3, window_bounds = array<i64: 1, 16, 128>}]} {
    %cst = arith.constant 0.000000e+00 : f32
    %0 = vector.broadcast %cst : f32 to vector<18x64xf32>
    %c0 = arith.constant 0 : index
    %c0_0 = arith.constant 0 : index
    %1 = vector.load %arg5[%c0, %c0_0] : memref<18x64xf32, #tpu.memory_space<vmem>>, vector<18x64xf32>
    tpu.vector_store %arg5[%c0, %c0_0], %0 {strides = array<i32>} : memref<18x64xf32, #tpu.memory_space<vmem>>, vector<18x64xf32>,
    %c0_1 = arith.constant 0 : index
    %c0_2 = arith.constant 0 : index
    %c0_3 = arith.constant 0 : index
    %2 = vector.load %arg1[%c0_1, %c0_2, %c0_3] : memref<1x16x64xf32, #tpu.memory_space<vmem>>, vector<1x16x64xf32>
    %3 = vector.shape_cast %2 : vector<1x16x64xf32> to vector<16x64xf32>
    %c1 = arith.constant 1 : index
    %c0_4 = arith.constant 0 : index
    %4 = vector.load %arg5[%c1, %c0_4] : memref<18x64xf32, #tpu.memory_space<vmem>>, vector<16x64xf32>
    tpu.vector_store %arg5[%c1, %c0_4], %3 {strides = array<i32>} : memref<18x64xf32, #tpu.memory_space<vmem>>, vector<16x64xf32>,
    %c0_5 = arith.constant 0 : index
    %c0_6 = arith.constant 0 : index
    %5 = vector.load %arg5[%c0_5, %c0_6] : memref<18x64xf32, #tpu.memory_space<vmem>>, vector<18x64xf32>
    %cst_7 = arith.constant 0.000000e+00 : f32
    %6 = vector.broadcast %cst_7 : f32 to vector<16x128xf32>
    %7 = vector.extract_strided_slice %5 {offsets = [0, 0], sizes = [16, 64], strides = [1, 1]} : vector<18x64xf32> to vector<16x64xf32>
    %c0_8 = arith.constant 0 : index
    %c0_9 = arith.constant 0 : index
    %c0_10 = arith.constant 0 : index
    %8 = vector.load %arg2[%c0_8, %c0_9, %c0_10] : memref<3x64x128xf32, #tpu.memory_space<vmem>>, vector<1x64x128xf32>
    %9 = vector.shape_cast %8 : vector<1x64x128xf32> to vector<64x128xf32>
    %cst_11 = arith.constant dense<0.000000e+00> : vector<16x128xf32>
    %10 = tpu.matmul %7, %9, %cst_11 {dimension_numbers = #tpu.dot_dimension_numbers<[1], [0], [0], [1], [0, 0, 1, 1], [], []>} : vector<16x64xf32>, vector<64x128xf32>, vector<16x128xf32> -> vector<16x128xf32>
    %11 = arith.addf %6, %10 : vector<16x128xf32>
    %12 = vector.extract_strided_slice %5 {offsets = [1, 0], sizes = [16, 64], strides = [1, 1]} : vector<18x64xf32> to vector<16x64xf32>
    %c1_12 = arith.constant 1 : index
    %c0_13 = arith.constant 0 : index
    %c0_14 = arith.constant 0 : index
    %13 = vector.load %arg2[%c1_12, %c0_13, %c0_14] : memref<3x64x128xf32, #tpu.memory_space<vmem>>, vector<1x64x128xf32>
    %14 = vector.shape_cast %13 : vector<1x64x128xf32> to vector<64x128xf32>
    %cst_15 = arith.constant dense<0.000000e+00> : vector<16x128xf32>
    %15 = tpu.matmul %12, %14, %cst_15 {dimension_numbers = #tpu.dot_dimension_numbers<[1], [0], [0], [1], [0, 0, 1, 1], [], []>} : vector<16x64xf32>, vector<64x128xf32>, vector<16x128xf32> -> vector<16x128xf32>
    %16 = arith.addf %11, %15 : vector<16x128xf32>
    %17 = vector.extract_strided_slice %5 {offsets = [2, 0], sizes = [16, 64], strides = [1, 1]} : vector<18x64xf32> to vector<16x64xf32>
    %c2 = arith.constant 2 : index
    %c0_16 = arith.constant 0 : index
    %c0_17 = arith.constant 0 : index
    %18 = vector.load %arg2[%c2, %c0_16, %c0_17] : memref<3x64x128xf32, #tpu.memory_space<vmem>>, vector<1x64x128xf32>
    %19 = vector.shape_cast %18 : vector<1x64x128xf32> to vector<64x128xf32>
    %cst_18 = arith.constant dense<0.000000e+00> : vector<16x128xf32>
    %20 = tpu.matmul %17, %19, %cst_18 {dimension_numbers = #tpu.dot_dimension_numbers<[1], [0], [0], [1], [0, 0, 1, 1], [], []>} : vector<16x64xf32>, vector<64x128xf32>, vector<16x128xf32> -> vector<16x128xf32>
    %21 = arith.addf %16, %20 : vector<16x128xf32>
    %c0_19 = arith.constant 0 : index
    %c0_20 = arith.constant 0 : index
    %22 = vector.load %arg3[%c0_19, %c0_20] : memref<1x128xf32, #tpu.memory_space<vmem>>, vector<1x128xf32>
    %23 = vector.broadcast %22 : vector<1x128xf32> to vector<16x128xf32>
    %24 = arith.addf %21, %23 : vector<16x128xf32>
    %cst_21 = arith.constant 0.000000e+00 : f32
    %25 = vector.broadcast %cst_21 : f32 to vector<16x128xf32>
    %26 = arith.cmpf oge, %24, %25 : vector<16x128xf32>
    %cst_22 = arith.constant 2.000000e-01 : f32
    %27 = vector.broadcast %cst_22 : f32 to vector<16x128xf32>
    %28 = arith.mulf %27, %24 : vector<16x128xf32>
    %29 = arith.select %26, %24, %28 : vector<16x128xi1>, vector<16x128xf32>
    %c0_23 = arith.constant 0 : index
    %c0_24 = arith.constant 0 : index
    %c0_25 = arith.constant 0 : index
    %30 = vector.load %arg4[%c0_23, %c0_24, %c0_25] : memref<1x16x128xf32, #tpu.memory_space<vmem>>, vector<1x16x128xf32>
    %31 = vector.shape_cast %30 : vector<1x16x128xf32> to vector<16x128xf32>
    %32 = vector.shape_cast %29 : vector<16x128xf32> to vector<1x16x128xf32>
    tpu.vector_store %arg4[%c0_23, %c0_24, %c0_25], %32 {strides = array<i32>} : memref<1x16x128xf32, #tpu.memory_space<vmem>>, vector<1x16x128xf32>,
    return
  }
  func.func @transform_0(%arg0: i32) -> (i32, i32, i32) {
    %c0_i32 = arith.constant 0 : i32
    %c0_i32_0 = arith.constant 0 : i32
    %c0_i32_1 = arith.constant 0 : i32
    return %arg0, %c0_i32, %c0_i32_0 : i32, i32, i32
  }
  func.func @transform_1(%arg0: i32) -> (i32, i32, i32) {
    %c0_i32 = arith.constant 0 : i32
    %c0_i32_0 = arith.constant 0 : i32
    %c0_i32_1 = arith.constant 0 : i32
    %c0_i32_2 = arith.constant 0 : i32
    return %c0_i32, %c0_i32_0, %c0_i32_1 : i32, i32, i32
  }
  func.func @transform_2(%arg0: i32) -> (i32, i32) {
    %c0_i32 = arith.constant 0 : i32
    %c0_i32_0 = arith.constant 0 : i32
    %c0_i32_1 = arith.constant 0 : i32
    return %c0_i32, %c0_i32_0 : i32, i32
  }
  func.func @transform_3(%arg0: i32) -> (i32, i32, i32) {
    %c0_i32 = arith.constant 0 : i32
    %c0_i32_0 = arith.constant 0 : i32
    %c0_i32_1 = arith.constant 0 : i32
    return %arg0, %c0_i32, %c0_i32_0 : i32, i32, i32
  }
}

</mosaic_0001>

<bundles_post_ra>
// kernel: tpu_custom_call.1
= control target key start
LH: loop header
LB: loop body
LE: loop exit
PB: predicated region body
PF: predicated region fallthrough
CT: control target
= control target key end

     0   :  { %8 = vsyncpa [#allocation4], 0  ;;  %s1222_s0 = inlined_call_operand.hbm [shape: f32[2,16,64], index: 0, kind: input, shape index: {}]   ;;  %s1223_s1 = inlined_call_operand.hbm [shape: f32[3,64,128], index: 1, kind: input, shape index: {}]   ;;  %s1224_s2 = inlined_call_operand.vmem [shape: f32[1,128], index: 2, kind: input, shape index: {}]   ;;  %s1225_s3 = inlined_call_operand.hbm [shape: f32[2,16,128], index: 3, kind: output, shape index: {}]  }
   0x1   :  { %10 = vsyncpa [#allocation4 + $0x1], 0 }
   0x2   :  { %11 = vsyncpa [#allocation7], 0 }
   0x3   :  { %12 = vsyncpa [#allocation5], 0 }
   0x4   :  { %14 = vsyncpa [#allocation5 + $0x1], 0  ;;  %s994_s12 = smov 0   ;;  %s996_s13 = smov 0  }
   0x5   :  { %s998_s14 = smov 0   ;;  %s1000_s15 = smov 0  }
   0x6 LB: > { %s1015_s16 = sadd.s32 4294967295, %s964_s15   ;;  %s610_s17 = sadd.s32 4294967294, %s964_s15   ;;  %s964_s15 = sphi %s1000_s15, %s1245_s15   ;;  %s960_s14 = sphi %s998_s14, %s1244_s14   ;;  %s956_s13 = sphi %s996_s13, %s1243_s13   ;;  %s952_s12 = sphi %s994_s12, %s1242_s12  }
   0x7   : > { %p40_p0 = scmp.ne.s32.totalorder %s956_s13, %s952_s12  ;;  %p1226_p1 = scmp.eq.s32.totalorder %s1015_s16, 0 }
   0x8   : > { %p112_p3 = scmp.eq.s32.totalorder %s610_s17, 1  ;;  %p611_p5 = scmp.ge.s32.totalorder %s964_s15, 1 }
   0x9   : > { %p1024_p4 = por %p1226_p1, %p40_p0  ;;  %p119_p7 = scmp.lt.s32.totalorder %s964_s15, 3 }
   0xa   : > { %p1029_p6 = por %p112_p3, %p40_p0  ;;  %s966_s21 = smov [#allocation6]  }
   0xb   : > { %s1229_s18 = scalar_select %p1024_p4, 1, 0 }
   0xc   : > { %s1230_s19 = scalar_select %p1029_p6, 1, 0 }
   0xd   : > { %p1034_p8 = pnand %p611_p5, %p119_p7  ;;  %s131_s22 = sshll.u32 %s966_s21, 4  ;;  %s1038_s22 = int_to_ptr.vmem [resolvable:$true] %s131_s22 }
   0xe   : > { %s1050_s24 = sadd.s32 1, %s964_s15   ;;  %s27_s25 = sadd.s32 1, %s960_s14 }
   0xf   : > { %s1231_s20 = scalar_select %p1034_p8, 1, 0 }
  0x10   : > { %p782_p9 = pneg %p1034_p8  ;;  %s24_s26 = ssub.s32 %s964_s15, %s1050_s24 }
  0x11   : > { %s836_s29 = scalar_lea.hbm %s1223_s1, 3072 }
  0x12   : > { %p1045_p11 = pnand %p782_p9, %p1226_p1  ;;  %p837_p12 = scmp.ne.s32.totalorder %s1223_s1, %s836_s29 }
  0x13   : > { %p843_p5 = scmp.lt.u32.totalorder %s836_s29, %s1223_s1 }
  0x14   : > { %p838_p13 = pneg %p1045_p11 }
  0x16   : > { %p839_p0 = pnand %p838_p13, %p837_p12 }
  0x18   : > { %p840_p3 = pneg %p839_p0 }
  0x1a   : > { %p845_p7 = pnand %p843_p5, %p840_p3 }
  0x1c   : > { %848 = shalt.err (!%p845_p7)
}
  0x1d   : > { %s849_s7 = scalar_lea.vmem %s1038_s22, 3072  ;;  %p857_p2 = scmp.lt.s32.totalorder %s1038_s22, %s1038_s22 }
  0x1e   : > { %p850_p9 = scmp.ne.s32.totalorder %s1038_s22, %s849_s7  ;;  %p858_p6 = scmp.lt.s32.totalorder %s849_s7, %s849_s7 }
  0x20   : > { %p852_p10 = pnand %p850_p9, %p838_p13  ;;  %p859_p4 = por %p858_p6, %p857_p2 }
  0x22   : > { %p853_p1 = pneg %p852_p10 }
  0x24   : > { %p860_p8 = pnand %p859_p4, %p853_p1 }
  0x26   : > { %863 = shalt.err (!%p860_p8)
}
  0x27   : > { %s967_s8 = smov 128   ;;  %s968_s9 = smov 8  }
  0x28   : > { %785 = dma.hbm_to_vmem [thread:$0]  (!%p1045_p11), %s1223_s1, 3072, %s1038_s22, [#allocation7], %s967_s8, %s967_s8, %s968_s9  }
  0x29   : > { %p25_p1 = scmp.eq.s32.totalorder %s24_s26, 0  ;;  %p34_p2 = scmp.ne.s32.totalorder %s960_s14, %s956_s13 }
  0x2a   : > { %p35_p4 = scmp.eq.s32.totalorder %s964_s15, 0  ;;  %p795_p6 = scmp.lt.s32.totalorder %s964_s15, 2 }
  0x2b   : > { %s1084_s17 = scalar_select %p25_p1, %s960_s14, %s27_s25  }
  0x2c   : > { %p36_p8 = por %p35_p4, %p34_p2  ;;  %p1233_p10 = scmp.eq.s32.totalorder %s1015_s16, 1 }
  0x2d   : > { %s148_s23 = sand.u32 1, %s960_s14   ;;  %s633_s27 = sshll.u32 %s964_s15, 8 }
  0x2e   : > { %p1088_p12 = por %p1233_p10, %p34_p2  ;;  %s614_s28 = sshll.u32 %s148_s23, 4 }
  0x2f   : > { %s1097_s4 = scalar_lea.hbm %s1222_s0, %s633_s27  ;;  %s152_s22 = scalar_lea.vmem [#allocation3], %s614_s28 }
  0x30   : > { %s159_s25 = sshll.u32 %s152_s22, 4  ;;  %p1099_p11 = pnand %p795_p6, %p36_p8  ;;  %s1103_s25 = int_to_ptr.vmem [resolvable:$true] %s159_s25 }
  0x31   : > { %s1105_s5 = scalar_lea.sflag [#allocation4], %s148_s23  ;;  %s864_s6 = scalar_lea.hbm %s1097_s4, 256 }
  0x32   : > { %p865_p13 = scmp.ne.s32.totalorder %s1097_s4, %s864_s6  ;;  %p866_p0 = pneg %p1099_p11 }
  0x33   : > { %s869_s11 = scalar_lea.hbm %s1222_s0, 512  ;;  %p870_p7 = scmp.lt.u32.totalorder %s1097_s4, %s1222_s0 }
  0x34   : > { %p867_p3 = pnand %p866_p0, %p865_p13  ;;  %p871_p9 = scmp.lt.u32.totalorder %s869_s11, %s864_s6 }
  0x35   : > { %p873_p2 = scmp.lt.u32.totalorder %s864_s6, %s1097_s4 }
  0x36   : > { %p868_p5 = pneg %p867_p3  ;;  %p872_p1 = por %p871_p9, %p870_p7 }
  0x38   : > { %p874_p4 = por %p873_p2, %p872_p1 }
  0x3a   : > { %p875_p6 = pnand %p874_p4, %p868_p5 }
  0x3c   : > { %878 = shalt.err (!%p875_p6)
}
  0x3d   : > { %s879_s23 = scalar_lea.vmem %s1103_s25, 256  ;;  %s969_s29 = smov [#allocation3]  }
  0x3e   : > { %p880_p8 = scmp.ne.s32.totalorder %s1103_s25, %s879_s23  ;;  %s884_s30 = sshll.u32 %s969_s29, 4  ;;  %s885_s30 = int_to_ptr.vmem [resolvable:$false] %s884_s30 }
  0x3f   : > { %s886_s22 = scalar_lea.vmem %s885_s30, 512  ;;  %p887_p3 = scmp.lt.s32.totalorder %s1103_s25, %s885_s30 }
  0x40   : > { %p882_p10 = pnand %p880_p8, %p866_p0  ;;  %p888_p7 = scmp.lt.s32.totalorder %s886_s22, %s879_s23 }
  0x42   : > { %p883_p13 = pneg %p882_p10  ;;  %p889_p9 = por %p888_p7, %p887_p3 }
  0x44   : > { %p890_p1 = pnand %p889_p9, %p883_p13 }
  0x46   : > { %893 = shalt.err (!%p890_p1)
}
  0x47   : > { %789 = dma.hbm_to_vmem [thread:$0]  (!%p1099_p11), %s1097_s4, 256, %s1103_s25, %s1105_s5, %s967_s8, %s967_s8, %s968_s9  }
  0x48   : > { %p1236_p0 = scmp.ne.s32.totalorder %s1231_s20, 0 }
  0x49   : > { %s1139_s6 = sand.u32 (!%p1236_p0), 1, %s956_s13   ;;  %p1237_p5 = scmp.ne.s32.totalorder (!%p1236_p0), %s1229_s18, 0 }
  0x4a   : > { %171 = sbr.rel (%p1236_p0) target bundleno = 355 (0x163), region = 32  ;;  %s618_s7 = sshll.u32 (!%p1236_p0), %s1139_s6, 4 }
  0x4b   : > { %s174_s10 = scalar_lea.sflag (!%p1236_p0), [#allocation4], %s1139_s6  ;;  %s177_s26 = scalar_lea.vmem (!%p1236_p0), [#allocation3], %s618_s7 }
  0x51   : > { %939 = dma.done.wait (%p1237_p5), %s174_s10, 256  }
  0x52   : > { %941 = vsyncadd (%p1237_p5), %s174_s10, 4294967040  ;;  %p1238_p11 = scmp.eq.s32.totalorder %s1015_s16, 0 }
  0x54   : > { %943 = dma.done.wait (%p1238_p11), [#allocation7], 3072   ;;  %p1239_p2 = pmov %p1238_p11 }
  0x55   : > { %vm204_vm0 = vcmask 523264   ;;  %vm207_vm1 = vcmask 517120   ;;  %v970_v0 = vmov 0.0   ;;  %v216_v1 = vld [vmem:[#allocation6] sm:$0xff]  ;;  %v217_v2 = vld [vmem:[#allocation6 + $0x8] sm:$0xff]  ;;  %v218_v3 = vld [vmem:[#allocation6 + $0x10] sm:$0xff] }
  0x56   : > { %945 = vsyncadd (%p1239_p2), [#allocation7], 4294964224  ;;  %205 = vst.msk [vmem:[#allocation2] sm:$0xff] %vm204_vm0, %v970_v0  ;;  %v738_v4 = vpack.c.bf16 %v217_v2, %v216_v1  ;;  %v219_v5 = vld [vmem:[#allocation6 + $0x18] sm:$0xff]  ;;  %v220_v7 = vld [vmem:[#allocation6 + $0x20] sm:$0xff]  ;;  %vm236_vm2 = vcmask 1046528  }
  0x57   : > { %206 = vst.msk [vmem:[#allocation2 + $0x8] sm:$0xff] %vm204_vm0, %v970_v0  ;;  %v742_v6 = vpack.c.bf16 %v219_v5, %v218_v3  ;;  %v221_v8 = vld [vmem:[#allocation6 + $0x28] sm:$0xff]  ;;  %v225_v9 = vld [vmem:[#allocation6 + $0x40] sm:$0xff]  ;;  %v227_v14 = vld [vmem:[#allocation6 + $0x50] sm:$0xff]  ;;  %vm409_vm3 = vcmask 1045504   ;;  %s203_s8 = scalar_lea.vmem [#allocation8], %s618_s7 }
  0x58   : > { %208 = vst.msk [vmem:[#allocation2 + $0x10] sm:$0x3] %vm207_vm1, %v970_v0  ;;  %739 = vmatprep.subr.bf16.mxu0 %v738_v4  ;;  %v226_v10 = vld [vmem:[#allocation6 + $0x48] sm:$0xff]  ;;  %v209_v11 = vld [vmem:[%s177_s26] sm:$0xff]  ;;  %v746_v15 = vpack.c.bf16 %v221_v8, %v220_v7  ;;  %v228_v17 = vld [vmem:[#allocation6 + $0x58] sm:$0xff]  ;;  %s527_s9 = sshll.u32 %s203_s8, 4  ;;  %s1173_s9 = int_to_ptr.vmem [resolvable:$true] %s527_s9 }
  0x59   : > { %741 = vmatpush3.bf16.msra.mxu0 %v738_v4  ;;  %v722_v12 = vpack.c.bf16 %v226_v10, %v225_v9  ;;  %211 = vst.msk [vmem:[#allocation2 + $0x1] sm:$0xff] %vm204_vm0, %v209_v11  ;;  %v210_v13 = vld [vmem:[%s177_s26 + $0x8] sm:$0xff]  ;;  %v222_v16 = vld [vmem:[#allocation6 + $0x30] sm:$0xff]  ;;  %v726_v19 = vpack.c.bf16 %v228_v17, %v227_v14  ;;  %v229_v20 = vld [vmem:[#allocation6 + $0x60] sm:$0xff]  ;;  %s634_s4 = sshll.u32 %s1015_s16, 8  ;;  %s514_s16 = scalar_lea.sflag [#allocation5], %s1139_s6 }
  0x5a   : > { %743 = vmatprep.subr.bf16.mxu0 %v742_v6  ;;  %212 = vst.msk [vmem:[#allocation2 + $0x9] sm:$0xff] %vm204_vm0, %v210_v13  ;;  %v223_v18 = vld [vmem:[#allocation6 + $0x38] sm:$0xff]  ;;  %v230_v21 = vld [vmem:[#allocation6 + $0x68] sm:$0xff]  ;;  %v231_v24 = vld [vmem:[#allocation6 + $0x70] sm:$0xff]  ;;  %s1178_s11 = scalar_lea.hbm %s1225_s3, %s634_s4  ;;  %s894_s27 = scalar_lea.vmem %s1173_s9, 256 }
  0x5b   : > { %723 = vmatprep.subr.bf16.mxu1 %v722_v12  ;;  %v750_v22 = vpack.c.bf16 %v223_v18, %v222_v16  ;;  %v730_v23 = vpack.c.bf16 %v230_v21, %v229_v20  ;;  %v232_v25 = vld [vmem:[#allocation6 + $0x78] sm:$0xff]  ;;  %v401_v26 = vld [vmem:[#allocation6 + $0x80] sm:$0xff]  ;;  %v402_v27 = vld [vmem:[#allocation6 + $0x88] sm:$0xff]  ;;  %p895_p4 = scmp.ne.s32.totalorder %s1173_s9, %s894_s27  ;;  %s971_s28 = smov [#allocation8]  }
  0x5c   : > { %725 = vmatpush3.bf16.msra.mxu1 %v722_v12  ;;  %v734_v31 = vpack.c.bf16 %v232_v25, %v231_v24  ;;  %v754_v34 = vpack.c.bf16 %v402_v27, %v401_v26  ;;  %v403_v37 = vld [vmem:[#allocation6 + $0x90] sm:$0xff]  ;;  %v404_v38 = vld [vmem:[#allocation6 + $0x98] sm:$0xff]  ;;  %v405_v43 = vld [vmem:[#allocation6 + $0xa0] sm:$0xff]  ;;  %s898_s23 = sshll.u32 %s971_s28, 4  ;;  %s899_s23 = int_to_ptr.vmem [resolvable:$false] %s898_s23 }
  0x5d   : > { %745 = vmatpush3.bf16.msra.mxu0 %v742_v6  ;;  %727 = vmatprep.subr.bf16.mxu1 %v726_v19  ;;  %v758_v41 = vpack.c.bf16 %v404_v38, %v403_v37  ;;  %v406_v44 = vld [vmem:[#allocation6 + $0xa8] sm:$0xff]  ;;  %v407_v47 = vld [vmem:[#allocation6 + $0xb0] sm:$0xff]  ;;  %v408_v48 = vld [vmem:[#allocation6 + $0xb8] sm:$0xff]  ;;  %p896_p6 = pnand %p895_p4, %p1088_p12  ;;  %s900_s29 = scalar_lea.vmem %s899_s23, 512 }
  0x5e   : > { %747 = vmatprep.subr.bf16.mxu0 %v746_v15  ;;  %v762_v46 = vpack.c.bf16 %v406_v44, %v405_v43  ;;  %v766_v49 = vpack.c.bf16 %v408_v48, %v407_v47  ;;  %v627_v55 = vld [vmem:[%s1224_s2] ss:$0 sm:$0xff]  ;;  %p901_p10 = scmp.lt.s32.totalorder %s1173_s9, %s899_s23  ;;  %p902_p13 = scmp.lt.s32.totalorder %s900_s29, %s894_s27 }
  0x5f   : > { %p897_p8 = pneg %p896_p6 }
  0x60   : > { %v213_v28 = vld [vmem:[#allocation2] sm:$0xff]  ;;  %729 = vmatpush3.bf16.msra.mxu1 %v726_v19  ;;  %p903_p3 = por %p902_p13, %p901_p10 }
  0x61   : > { %749 = vmatpush3.bf16.msra.mxu0 %v746_v15  ;;  %v237_v29 = vrot.slane %v213_v28, 1  ;;  %700 = vmatprep.mubr.msk.f32.mxu0 %vm204_vm0, %v213_v28  ;;  %v214_v30 = vld [vmem:[#allocation2 + $0x8] sm:$0xff]  ;;  %v215_v32 = vld [vmem:[#allocation2 + $0x10] sm:$0x3]  ;;  %v410_v33 = vrot.slane %v213_v28, 2 }
  0x62   : > { %751 = vmatprep.subr.bf16.mxu0 %v750_v22  ;;  %v411_v35 = vrot.slane %v214_v30, 2  ;;  %731 = vmatprep.subr.bf16.mxu1 %v730_v23  ;;  %v238_v36 = vrot.slane %v214_v30, 1  ;;  %v240_v40 = vrot.slane %v215_v32, 1  ;;  %v413_v50 = vrot.slane %v215_v32, 2  ;;  %p904_p7 = pnand %p903_p3, %p897_p8 }
  0x64   : > { %733 = vmatpush3.bf16.msra.mxu1 %v730_v23  ;;  %v239_v39 = vsel %vm236_vm2, %v237_v29, %v238_v36  ;;  %v412_v42 = vsel %vm409_vm3, %v410_v33, %v411_v35  ;;  %v241_v45 = vsel %vm236_vm2, %v238_v36, %v240_v40  ;;  %v414_v51 = vsel %vm409_vm3, %v411_v35, %v413_v50 }
  0x65   : > { %753 = vmatpush3.bf16.msra.mxu0 %v750_v22  ;;  %735 = vmatprep.subr.bf16.mxu1 %v734_v31 }
  0x66   : > { %755 = vmatprep.subr.bf16.mxu0 %v754_v34  ;;  %681 = vmatprep.mubr.msk.f32.mxu1 %vm204_vm0, %v239_v39 }
  0x68   : > { %701 = vmatmul.mubr.msk.f32.vlgmr.msra.gmra.mrb[0].mxu0 %vm204_vm0, %v214_v30  ;;  %737 = vmatpush3.bf16.msra.mxu1 %v734_v31 }
  0x69   : > { %757 = vmatpush3.bf16.msra.mxu0 %v754_v34  ;;  %719 = vmatprep.mubr.msk.f32.mxu0 %vm204_vm0, %v412_v42 }
  0x6a   : > { %759 = vmatprep.subr.bf16.mxu0 %v758_v41 }
  0x6b   : > { %682 = vmatmul.mubr.msk.f32.vlgmr.msra.gmra.mrb[0].mxu1 %vm204_vm0, %v241_v45 }
  0x6d   : > { %761 = vmatpush3.bf16.msra.mxu0 %v758_v41 }
  0x6e   : > { %763 = vmatprep.subr.bf16.mxu0 %v762_v46 }
  0x71   : > { %765 = vmatpush3.bf16.msra.mxu0 %v762_v46 }
  0x72   : > { %767 = vmatprep.subr.bf16.mxu0 %v766_v49 }
  0x75   : > { %769 = vmatpush3.bf16.msra.mxu0 %v766_v49 }
  0x78   : > { %720 = vmatmul.mubr.msk.f32.vlgmr.msra.gmra.mrb[0].mxu0 %vm204_vm0, %v414_v51 }
 0x13e   : > { %v683_v52 = vpop.f32.mrb[0].mxu1 }
 0x13f   : > { %v312_v53 = vpop.f32.mrb[1].mxu1 }
 0x14b   : > { %v721_v54 = vpop.f32.mrb[0].mxu0 }
 0x14c   : > { %v770_v56 = vadd.f32 %v721_v54, %v683_v52  ;;  %v485_v57 = vpop.f32.mrb[1].mxu0 }
 0x14d   : > { %v771_v58 = vadd.f32 %v485_v57, %v312_v53 }
 0x14e   : > { %v504_v59 = vadd.f32 %v770_v56, %v627_v55 }
 0x14f   : > { %v503_v60 = vadd.f32 %v771_v58, %v627_v55 }
 0x150   : > { %vm506_vm4 = vcmp.ge.f32.partialorder %v504_v59, 0.0  ;;  %v508_v61 = vmul.f32 0.2, %v504_v59 }
 0x151   : > { %vm505_vm5 = vcmp.ge.f32.partialorder %v503_v60, 0.0  ;;  %v507_v62 = vmul.f32 0.2, %v503_v60 }
 0x152   : > { %v510_v63 = vsel %vm506_vm4, %v504_v59, %v508_v61 }
 0x153   : > { %512 = vst [vmem:[%s203_s8 + $0x8] sm:$0xff] %v510_v63  ;;  %v509_v0 = vsel %vm505_vm5, %v503_v60, %v507_v62 }
 0x154   : > { %511 = vst [vmem:[%s203_s8] sm:$0xff] %v509_v0 }
 0x155   : > { %907 = shalt.err (!%p904_p7)
}
 0x156   : > { %s908_s30 = scalar_lea.hbm %s1178_s11, 256  ;;  %s912_s10 = scalar_lea.hbm %s1225_s3, 512 }
 0x157   : > { %p909_p9 = scmp.ne.s32.totalorder %s1178_s11, %s908_s30  ;;  %p913_p5 = scmp.lt.u32.totalorder %s1178_s11, %s1225_s3 }
 0x158   : > { %p914_p11 = scmp.lt.u32.totalorder %s912_s10, %s908_s30  ;;  %p916_p4 = scmp.lt.u32.totalorder %s908_s30, %s1178_s11 }
 0x159   : > { %p910_p1 = pnand %p909_p9, %p1088_p12 }
 0x15a   : > { %p915_p2 = por %p914_p11, %p913_p5 }
 0x15b   : > { %p911_p0 = pneg %p910_p1 }
 0x15c   : > { %p917_p6 = por %p916_p4, %p915_p2 }
 0x15e   : > { %p918_p8 = pnand %p917_p6, %p911_p0 }
 0x160   : > { %921 = shalt.err (!%p918_p8)
}
 0x161   : > { %s972_s20 = smov 128   ;;  %s973_s8 = smov 8  }
 0x162   : > { %780 = dma.vmem_to_hbm [thread:$0]  (%p1088_p12), %s1173_s9, 256, %s1178_s11, %s514_s16, %s972_s20, %s972_s20, %s973_s8  }
 0x163 PF: > { %s542_s4 = sand.u32 1, %s952_s12   ;;  %p1240_p10 = scmp.ne.s32.totalorder %s1230_s19, 0 }
 0x164   : > { %p1241_p13 = scmp.ge.s32.totalorder %s964_s15, 2  ;;  %s543_s25 = scalar_lea.sflag [#allocation5], %s542_s4 }
 0x166   : > { %p791_p3 = pnand %p1241_p13, %p1240_p10 }
 0x168   : > { %947 = dma.done.wait (!%p791_p3), %s543_s25, 256  }
 0x169   : > { %949 = vsyncadd (!%p791_p3), %s543_s25, 4294967040  ;;  %p17_p7 = scmp.ge.s32.totalorder %s1050_s24, 4   ;;  %s1242_s12 = smov %s956_s13 }
 0x16a   : > { %s1243_s13 = smov %s960_s14  ;;  %s1244_s14 = smov %s1084_s17 }
 0x16b   : > { %s1245_s15 = smov %s1050_s24  ;;  %19 = sbr.rel (!%p17_p7) target bundleno = 6 (0x6), region = 83 }
 0x172   :  { %548 = vsyncpa [#allocation4], 1 }
 0x173   :  { %550 = vsyncpa [#allocation4 + $0x1], 1 }
 0x174   :  { %551 = vsyncpa [#allocation7], 1 }
 0x175   :  { %552 = vsyncpa [#allocation5], 1 }
 0x176   :  { %554 = vsyncpa [#allocation5 + $0x1], 1 }

</bundles_post_ra>
